<compile_context>
chip_gen: v7x
topology: tpu7x:2x2x1
jax: 0.10.0
libtpu: 0.0.40
codegen_flags: <defaults>
</compile_context>

<pallas_src>
import math

import jax
import jax.numpy as jnp
from jax.experimental import pallas as pl
from jax.experimental.pallas import tpu as pltpu


def _round_up(x, m):
    return ((x + m - 1) // m) * m


def _vmem_capacity_bytes():
    """Best-effort VMEM capacity query; conservative fallback (v7x = 64 MiB)."""
    try:
        info = pltpu.get_tpu_info()
        for attr in ("vmem_capacity_bytes", "vmem_bytes", "vmem_size_bytes"):
            v = getattr(info, attr, None)
            if v:
                return int(v)
    except Exception:
        pass
    return 64 << 20


def _make_siren_kernel(*, w0, has_bias, gamma_mode, beta_mode, use_acc):
    """gamma_mode / beta_mode in {"none", "row", "full"} (static specialization)."""

    def finalize(out_f32, b_ref, g_ref, be_ref, o_ref):
        if has_bias:
            out_f32 = out_f32 + b_ref[...].astype(jnp.float32)
        if gamma_mode != "none":
            out_f32 = out_f32 * g_ref[...].astype(jnp.float32)
        if beta_mode != "none":
            out_f32 = out_f32 + be_ref[...].astype(jnp.float32)
        o_ref[...] = jnp.sin(w0 * out_f32).astype(o_ref.dtype)

    def kernel(*refs):
        it = iter(refs)
        x_ref = next(it)                                    # (tm, tk)
        w_ref = next(it)                                    # (tk, Dout_p)  (pre-transposed)
        b_ref = next(it) if has_bias else None              # (1, Dout_p)
        g_ref = next(it) if gamma_mode != "none" else None  # (1|tm, Dout_p)
        be_ref = next(it) if beta_mode != "none" else None  # (1|tm, Dout_p)
        o_ref = next(it)                                    # (tm, Dout_p)
        acc_ref = next(it) if use_acc else None             # (tm, Dout_p) f32

        partial = jnp.dot(x_ref[...], w_ref[...],
                          preferred_element_type=jnp.float32)

        if not use_acc:
            finalize(partial, b_ref, g_ref, be_ref, o_ref)
        else:
            k = pl.program_id(1)

            @pl.when(k == 0)
            def _():
                acc_ref[...] = jnp.zeros_like(acc_ref)

            acc_ref[...] += partial

            @pl.when(k == pl.num_programs(1) - 1)
            def _():
                finalize(acc_ref[...], b_ref, g_ref, be_ref, o_ref)

    return kernel


def siren_forward(x, weight, bias=None, gamma=None, beta=None, *,
                  w0=1.0, tm=None, tk=None):
    """Pallas Siren forward.

    x: [B, Din], weight: [Dout, Din] (PyTorch layout), bias: [Dout] or None,
    gamma / beta: None, per-feature ([Dout] / [1, Dout] / scalar), or
    per-sample ([B, Dout]) FiLM modulation.
    """
    B, Din = x.shape
    Dout, Din_w = weight.shape
    assert Din_w == Din, (weight.shape, x.shape)
    dtype = x.dtype
    itemsize = jnp.dtype(dtype).itemsize

    # --- static specialization flags --------------------------------------
    has_bias = bias is not None

    def film_mode(p):
        if p is None:
            return "none"
        p = jnp.asarray(p)
        if p.ndim == 2 and p.shape[0] == B and B > 1:
            return "full"      # true per-sample stream
        return "row"           # broadcastable over batch -> single row

    gamma_mode = film_mode(gamma)
    beta_mode = film_mode(beta)

    # --- feature padding: lane-dense output, MXU-friendly K tiles ----------
    Dout_p = _round_up(Dout, 128)
    if tk is None:
        tk = Din if Din <= 1024 else 512
    tk = Din if tk >= Din else _round_up(tk, 128)
    Din_p = _round_up(Din, tk)
    num_k = Din_p // tk
    use_acc = num_k > 1

    # --- VMEM budget for this generation -----------------------------------
    vmem_cap = _vmem_capacity_bytes()
    vmem_limit = min(96 << 20, int(vmem_cap * 0.75))   # ~96 MiB on v5e/v6e, ~48 MiB on v7x
    budget = int(vmem_limit * 0.8)

    # --- batch tile sized against the budget --------------------------------
    if tm is None:
        b_target = _round_up(max(B, 8), 8)
        tm = 8
        for cand in (512, 256, 128, 64, 32, 16, 8):
            if cand > b_target:
                continue
            foot = 2 * cand * tk * itemsize            # x tile (double-buffered)
            foot += 2 * tk * Dout_p * itemsize         # weight tile
            foot += 2 * cand * Dout_p * itemsize       # output tile
            foot += cand * Dout_p * 4                  # f32 accumulator
            if gamma_mode == "full":
                foot += 2 * cand * Dout_p * itemsize
            if beta_mode == "full":
                foot += 2 * cand * Dout_p * itemsize
            if foot <= budget:
                tm = cand
                break
    tm = _round_up(int(tm), 8)
    B_p = _round_up(B, tm)

    # --- glue: pad / lay out the operands once in the wrapper ---------------
    x_p = jnp.pad(x, ((0, B_p - B), (0, Din_p - Din)))
    w_t = jnp.pad(weight.astype(dtype).T,
                  ((0, Din_p - Din), (0, Dout_p - Dout)))   # [Din_p, Dout_p]

    inputs = [x_p, w_t]
    in_specs = [
        pl.BlockSpec((tm, tk), lambda i, k: (i, k)),        # x
        pl.BlockSpec((tk, Dout_p), lambda i, k: (k, 0)),    # W^T (no in-kernel transpose)
    ]

    if has_bias:
        b2 = jnp.pad(jnp.asarray(bias, dtype=dtype).reshape(1, Dout),
                     ((0, 0), (0, Dout_p - Dout)))
        inputs.append(b2)
        in_specs.append(pl.BlockSpec((1, Dout_p), lambda i, k: (0, 0)))

    def add_film(p, mode):
        if mode == "none":
            return
        p = jnp.asarray(p, dtype=dtype)
        if mode == "row":
            row = jnp.broadcast_to(p.reshape(1, -1), (1, Dout))
            row = jnp.pad(row, ((0, 0), (0, Dout_p - Dout)))
            inputs.append(row)
            in_specs.append(pl.BlockSpec((1, Dout_p), lambda i, k: (0, 0)))
        else:  # "full": genuine per-sample FiLM stream
            full = jnp.broadcast_to(p, (B, Dout))
            full = jnp.pad(full, ((0, B_p - B), (0, Dout_p - Dout)))
            inputs.append(full)
            in_specs.append(pl.BlockSpec((tm, Dout_p), lambda i, k: (i, 0)))

    add_film(gamma, gamma_mode)
    add_film(beta, beta_mode)

    kernel = _make_siren_kernel(w0=float(w0), has_bias=has_bias,
                                gamma_mode=gamma_mode, beta_mode=beta_mode,
                                use_acc=use_acc)

    bytes_accessed = B_p * Dout_p * itemsize + sum(
        int(a.size) * a.dtype.itemsize for a in inputs)
    cost = pl.CostEstimate(flops=2 * B_p * Din_p * Dout_p,
                           transcendentals=B_p * Dout_p,
                           bytes_accessed=int(bytes_accessed))

    out_p = pl.pallas_call(
        kernel,
        out_shape=jax.ShapeDtypeStruct((B_p, Dout_p), dtype),
        grid_spec=pltpu.PrefetchScalarGridSpec(
            num_scalar_prefetch=0,
            grid=(B_p // tm, num_k),
            in_specs=in_specs,
            out_specs=pl.BlockSpec((tm, Dout_p), lambda i, k: (i, 0)),
            scratch_shapes=(
                [pltpu.VMEM((tm, Dout_p), jnp.float32)] if use_acc else []),
        ),
        compiler_params=pltpu.CompilerParams(
            dimension_semantics=("parallel", "arbitrary"),
            vmem_limit_bytes=vmem_limit,
        ),
        cost_estimate=cost,
    )(*inputs)

    return out_p[:B, :Dout]


def init_siren_params(key, dim_in, dim_out, *, w0=1.0, c=6.0, is_first=False,
                      use_bias=True, dtype=jnp.float32):
    """'uniform' initializer matching Siren.init_."""
    w_std = (1.0 / dim_in) if is_first else (math.sqrt(c / dim_in) / w0)
    kw, kb = jax.random.split(key)
    weight = jax.random.uniform(kw, (dim_out, dim_in), dtype=dtype,
                                minval=-w_std, maxval=w_std)
    bias = (jax.random.uniform(kb, (dim_out,), dtype=dtype,
                               minval=-w_std, maxval=w_std)
            if use_bias else None)
    return weight, bias


def siren_reference(x, weight, bias, gamma, beta, w0):
    out = x @ weight.T
    if bias is not None:
        out = out + bias
    if gamma is not None:
        out = out * gamma
    if beta is not None:
        out = out + beta
    return jnp.sin(w0 * out)


if __name__ == "__main__":
    key = jax.random.PRNGKey(0)
    k_param, k_x, k_g, k_b, k_param2, k_x2, k_g2 = jax.random.split(key, 7)

    # --- check 1: per-sample FiLM (gamma/beta [B, Dout]), w0 = 30 -----------
    B, DIM_IN, DIM_OUT = 8, 32, 32
    W0 = 30.0
    weight, bias = init_siren_params(k_param, DIM_IN, DIM_OUT, w0=W0,
                                     c=6.0, is_first=False, use_bias=True)
    x = jax.random.normal(k_x, (B, DIM_IN), dtype=jnp.float32)
    gamma = jax.random.normal(k_g, (B, DIM_OUT), dtype=jnp.float32)
    beta = jax.random.normal(k_b, (B, DIM_OUT), dtype=jnp.float32)

    out = jax.block_until_ready(siren_forward(x, weight, bias, gamma, beta, w0=W0))
    ref = siren_reference(x, weight, bias, gamma, beta, W0)
    assert out.shape == (B, DIM_OUT)
    assert jnp.allclose(out, ref, atol=1e-4, rtol=1e-4), (
        f"max abs err {jnp.max(jnp.abs(out - ref))}")

    # --- check 2: no FiLM, no extra streams (specialized kernel path) -------
    out2 = jax.block_until_ready(siren_forward(x, weight, bias, None, None, w0=W0))
    ref2 = siren_reference(x, weight, bias, None, None, W0)
    assert jnp.allclose(out2, ref2, atol=1e-4, rtol=1e-4), (
        f"max abs err {jnp.max(jnp.abs(out2 - ref2))}")

    # --- check 3: K-tiled accumulator path + per-feature gamma --------------
    B3, DIN3, DOUT3 = 16, 256, 96
    W03 = 1.0
    weight3, bias3 = init_siren_params(k_param2, DIN3, DOUT3, w0=W03,
                                       c=6.0, is_first=True, use_bias=True)
    x3 = jax.random.normal(k_x2, (B3, DIN3), dtype=jnp.float32)
    gamma3 = jax.random.normal(k_g2, (DOUT3,), dtype=jnp.float32)  # per-feature row

    out3 = jax.block_until_ready(
        siren_forward(x3, weight3, bias3, gamma3, None, w0=W03, tk=128))
    ref3 = siren_reference(x3, weight3, bias3, gamma3, None, W03)
    assert out3.shape == (B3, DOUT3)
    assert jnp.allclose(out3, ref3, atol=1e-4, rtol=1e-4), (
        f"max abs err {jnp.max(jnp.abs(out3 - ref3))}")

    print("KERNEL_OK")
</pallas_src>

<mosaic_0001>
module attributes {stable_mosaic.version = 11 : i64} {
  func.func @kernel(%arg0: i32, %arg1: i32, %arg2: memref<8x32xf32, #tpu.memory_space<vmem>>, %arg3: memref<32x128xf32, #tpu.memory_space<vmem>>, %arg4: memref<1x128xf32, #tpu.memory_space<vmem>>, %arg5: memref<8x128xf32, #tpu.memory_space<vmem>>, %arg6: memref<8x128xf32, #tpu.memory_space<vmem>>, %arg7: memref<8x128xf32, #tpu.memory_space<vmem>>) attributes {dimension_semantics = [#tpu.dimension_semantics<parallel>, #tpu.dimension_semantics<arbitrary>], iteration_bounds = array<i64: 1, 1>, scalar_prefetch = 0 : i64, scratch_operands = 0 : i64, tpu.core_type = #tpu.core_type<tc>, window_params = [{transform_indices = @transform_0, window_bounds = array<i64: 8, 32>}, {transform_indices = @transform_1, window_bounds = array<i64: 32, 128>}, {pipeline_mode = #tpu.pipeline_mode<synchronous>, transform_indices = @transform_2, window_bounds = array<i64: 1, 128>}, {transform_indices = @transform_3, window_bounds = array<i64: 8, 128>}, {transform_indices = @transform_4, window_bounds = array<i64: 8, 128>}, {transform_indices = @transform_5, window_bounds = array<i64: 8, 128>}]} {
    %c0 = arith.constant 0 : index
    %c0_0 = arith.constant 0 : index
    %0 = vector.load %arg2[%c0, %c0_0] : memref<8x32xf32, #tpu.memory_space<vmem>>, vector<8x32xf32>
    %c0_1 = arith.constant 0 : index
    %c0_2 = arith.constant 0 : index
    %1 = vector.load %arg3[%c0_1, %c0_2] : memref<32x128xf32, #tpu.memory_space<vmem>>, vector<32x128xf32>
    %cst = arith.constant dense<0.000000e+00> : vector<8x128xf32>
    %2 = tpu.matmul %0, %1, %cst {dimension_numbers = #tpu.dot_dimension_numbers<[1], [0], [0], [1], [0, 0, 1, 1], [], []>} : vector<8x32xf32>, vector<32x128xf32>, vector<8x128xf32> -> vector<8x128xf32>
    %c0_3 = arith.constant 0 : index
    %c0_4 = arith.constant 0 : index
    %3 = vector.load %arg4[%c0_3, %c0_4] : memref<1x128xf32, #tpu.memory_space<vmem>>, vector<1x128xf32>
    %4 = vector.broadcast %3 : vector<1x128xf32> to vector<8x128xf32>
    %5 = arith.addf %2, %4 : vector<8x128xf32>
    %c0_5 = arith.constant 0 : index
    %c0_6 = arith.constant 0 : index
    %6 = vector.load %arg5[%c0_5, %c0_6] : memref<8x128xf32, #tpu.memory_space<vmem>>, vector<8x128xf32>
    %7 = arith.mulf %5, %6 : vector<8x128xf32>
    %c0_7 = arith.constant 0 : index
    %c0_8 = arith.constant 0 : index
    %8 = vector.load %arg6[%c0_7, %c0_8] : memref<8x128xf32, #tpu.memory_space<vmem>>, vector<8x128xf32>
    %9 = arith.addf %7, %8 : vector<8x128xf32>
    %cst_9 = arith.constant 3.000000e+01 : f32
    %10 = vector.broadcast %cst_9 : f32 to vector<8x128xf32>
    %11 = arith.mulf %10, %9 : vector<8x128xf32>
    %12 = math.sin %11 : vector<8x128xf32>
    %c0_10 = arith.constant 0 : index
    %c0_11 = arith.constant 0 : index
    %13 = vector.load %arg7[%c0_10, %c0_11] : memref<8x128xf32, #tpu.memory_space<vmem>>, vector<8x128xf32>
    tpu.vector_store %arg7[%c0_10, %c0_11], %12 {strides = array<i32>} : memref<8x128xf32, #tpu.memory_space<vmem>>, vector<8x128xf32>,
    return
  }
  func.func @transform_0(%arg0: i32, %arg1: i32) -> (i32, i32) {
    %c0_i32 = arith.constant 0 : i32
    return %arg0, %arg1 : i32, i32
  }
  func.func @transform_1(%arg0: i32, %arg1: i32) -> (i32, i32) {
    %c0_i32 = arith.constant 0 : i32
    %c0_i32_0 = arith.constant 0 : i32
    return %arg1, %c0_i32 : i32, i32
  }
  func.func @transform_2(%arg0: i32, %arg1: i32) -> (i32, i32) {
    %c0_i32 = arith.constant 0 : i32
    %c0_i32_0 = arith.constant 0 : i32
    %c0_i32_1 = arith.constant 0 : i32
    return %c0_i32, %c0_i32_0 : i32, i32
  }
  func.func @transform_3(%arg0: i32, %arg1: i32) -> (i32, i32) {
    %c0_i32 = arith.constant 0 : i32
    %c0_i32_0 = arith.constant 0 : i32
    return %arg0, %c0_i32 : i32, i32
  }
  func.func @transform_4(%arg0: i32, %arg1: i32) -> (i32, i32) {
    %c0_i32 = arith.constant 0 : i32
    %c0_i32_0 = arith.constant 0 : i32
    return %arg0, %c0_i32 : i32, i32
  }
  func.func @transform_5(%arg0: i32, %arg1: i32) -> (i32, i32) {
    %c0_i32 = arith.constant 0 : i32
    %c0_i32_0 = arith.constant 0 : i32
    return %arg0, %c0_i32 : i32, i32
  }
}

</mosaic_0001>

<bundles_post_ra>
// kernel: tpu_custom_call.1
= control target key start
LH: loop header
LB: loop body
LE: loop exit
PB: predicated region body
PF: predicated region fallthrough
CT: control target
= control target key end

     0   :  { %10 = vsyncpa [#allocation3], 0  ;;  %s535_s0 = inlined_call_operand.hbm [shape: f32[8,32], index: 0, kind: input, shape index: {}]   ;;  %s536_s1 = inlined_call_operand.hbm [shape: f32[32,128], index: 1, kind: input, shape index: {}]   ;;  %s537_s2 = inlined_call_operand.vmem [shape: f32[1,128], index: 2, kind: input, shape index: {}]   ;;  %s538_s3 = inlined_call_operand.vmem [shape: f32[8,128], index: 3, kind: input, shape index: {}]   ;;  %s539_s4 = inlined_call_operand.hbm [shape: f32[8,128], index: 4, kind: input, shape index: {}]   ;;  %s540_s5 = inlined_call_operand.hbm [shape: f32[8,128], index: 5, kind: output, shape index: {}]  }
   0x1   :  { %11 = vsyncpa [#allocation6], 0 }
   0x2   :  { %12 = vsyncpa [#allocation4], 0  ;;  %s415_s18 = smov [#allocation5]   ;;  %s321_s22 = scalar_lea.hbm %s536_s1, 512 }
   0x3   :  { %s28_s19 = sshll.u32 %s415_s18, 4  ;;  %p322_p0 = scmp.ne.s32.totalorder %s536_s1, %s321_s22  ;;  %s29_s19 = int_to_ptr.vmem [resolvable:$true] %s28_s19 }
   0x4   :  { %p325_p1 = scmp.lt.u32.totalorder %s321_s22, %s536_s1 }
   0x6   :  { %p327_p2 = pnand %p325_p1, %p322_p0 }
   0x8   :  { %330 = shalt.err (!%p327_p2)
}
   0x9   :  { %s331_s27 = scalar_lea.vmem %s29_s19, 512  ;;  %p336_p4 = scmp.lt.s32.totalorder %s29_s19, %s29_s19 }
   0xa   :  { %p332_p3 = scmp.ne.s32.totalorder %s29_s19, %s331_s27  ;;  %p337_p5 = scmp.lt.s32.totalorder %s331_s27, %s331_s27 }
   0xc   :  { %p338_p6 = por %p337_p5, %p336_p4 }
   0xe   :  { %p339_p7 = pnand %p338_p6, %p332_p3 }
  0x10   :  { %342 = shalt.err (!%p339_p7)
}
  0x11   :  { %s416_s28 = smov 128   ;;  %s417_s29 = smov 8  }
  0x12   :  { %34 = dma.hbm_to_vmem [thread:$0]  %s536_s1, 512, %s29_s19, [#allocation6], %s416_s28, %s416_s28, %s417_s29  }
  0x13   :  { %s418_s7 = smov [#allocation2]   ;;  %s419_s9 = smov [#allocation7]  }
  0x14   :  { %s19_s8 = sshll.u32 %s418_s7, 4  ;;  %s45_s10 = sshll.u32 %s419_s9, 4  ;;  %s20_s8 = int_to_ptr.vmem [resolvable:$true] %s19_s8  ;;  %s46_s10 = int_to_ptr.vmem [resolvable:$true] %s45_s10 }
  0x15   :  { %s343_s13 = scalar_lea.hbm %s535_s0, 128 }
  0x16   :  { %p344_p8 = scmp.ne.s32.totalorder %s535_s0, %s343_s13  ;;  %p347_p9 = scmp.lt.u32.totalorder %s343_s13, %s535_s0 }
  0x18   :  { %p349_p10 = pnand %p347_p9, %p344_p8 }
  0x1a   :  { %352 = shalt.err (!%p349_p10)
}
  0x1b   :  { %s353_s1 = scalar_lea.vmem %s20_s8, 128  ;;  %p358_p12 = scmp.lt.s32.totalorder %s20_s8, %s20_s8 }
  0x1c   :  { %p354_p11 = scmp.ne.s32.totalorder %s20_s8, %s353_s1  ;;  %p359_p13 = scmp.lt.s32.totalorder %s353_s1, %s353_s1 }
  0x1e   :  { %p360_p0 = por %p359_p13, %p358_p12 }
  0x20   :  { %p361_p1 = pnand %p360_p0, %p354_p11 }
  0x22   :  { %364 = shalt.err (!%p361_p1)
}
  0x23   :  { %22 = dma.hbm_to_vmem [thread:$0]  %s535_s0, 128, %s20_s8, [#allocation3]  }
  0x24   :  { %s365_s22 = scalar_lea.hbm %s539_s4, 128 }
  0x25   :  { %p366_p2 = scmp.ne.s32.totalorder %s539_s4, %s365_s22  ;;  %p369_p3 = scmp.lt.u32.totalorder %s365_s22, %s539_s4 }
  0x27   :  { %p371_p4 = pnand %p369_p3, %p366_p2 }
  0x29   :  { %374 = shalt.err (!%p371_p4)
}
  0x2a   :  { %s375_s27 = scalar_lea.vmem %s46_s10, 128  ;;  %p380_p6 = scmp.lt.s32.totalorder %s46_s10, %s46_s10 }
  0x2b   :  { %p376_p5 = scmp.ne.s32.totalorder %s46_s10, %s375_s27  ;;  %p381_p7 = scmp.lt.s32.totalorder %s375_s27, %s375_s27 }
  0x2d   :  { %p382_p8 = por %p381_p7, %p380_p6 }
  0x2f   :  { %p383_p9 = pnand %p382_p8, %p376_p5 }
  0x31   :  { %386 = shalt.err (!%p383_p9)
}
  0x32   :  { %48 = dma.hbm_to_vmem [thread:$0]  %s539_s4, 128, %s46_s10, [#allocation6]  }
  0x33   :  { %409 = dma.done.wait [#allocation3], 128  }
  0x34   :  { %410 = vsyncadd [#allocation3], 4294967168 }
  0x35   :  { %411 = dma.done.wait [#allocation6], 640  }
  0x36   :  { %412 = vsyncadd [#allocation6], 4294966656  ;;  %v420_v0 = vmov 0.0|0.0   ;;  %vm421_vm0 = vmmov 0   ;;  %v422_v1 = vmov 0.0   ;;  %v59_v2 = vld [vmem:[#allocation5] sm:$0xff] }
  0x37   :  { %292 = vmatprep.subr.bf16.mxu0 %v420_v0  ;;  %289 = vmatprep.mubr.msk.f32.mxu0 %vm421_vm0, %v422_v1  ;;  %v60_v3 = vld [vmem:[#allocation5 + $0x8] sm:$0xff]  ;;  %v61_v4 = vld [vmem:[#allocation5 + $0x10] sm:$0xff]  ;;  %v62_v6 = vld [vmem:[#allocation5 + $0x18] sm:$0xff]  ;;  %vm70_vm1 = vcmask 261120   ;;  %v423_v28 = vmov 683565275  }
  0x38   :  { %v293_v5 = vpack.c.bf16 %v60_v3, %v59_v2  ;;  %v296_v7 = vpack.c.bf16 %v62_v6, %v61_v4  ;;  %v58_v8 = vld [vmem:[#allocation2] sm:$0xff]  ;;  %v146_v14 = vld [vmem:[#allocation7] sm:$0xff]  ;;  %v424_v30 = vmov 2475754826   ;;  %v425_v33 = vmov 2131351028  }
  0x39   :  { %v270_v9 = vld [vmem:[%s537_s2] ss:$0 sm:$0xff]  ;;  %v426_v36 = vmov 2102212464   ;;  %v427_v39 = vmov 920167782  }
  0x3a   :  { %294 = vmatpush3.bf16.msra.mxu0 %v293_v5  ;;  %v144_v11 = vld [vmem:[%s538_s3] sm:$0xff]  ;;  %v428_v42 = vmov 1326507024   ;;  %s429_s2 = smov [#allocation8]  }
  0x3b   :  { %295 = vmatprep.subr.bf16.mxu0 %v420_v0  ;;  %s260_s3 = sshll.u32 %s429_s2, 4  ;;  %s261_s3 = int_to_ptr.vmem [resolvable:$true] %s260_s3 }
  0x3c   :  { %s387_s7 = scalar_lea.vmem %s261_s3, 128  ;;  %p392_p11 = scmp.lt.s32.totalorder %s261_s3, %s261_s3 }
  0x3d   :  { %p388_p10 = scmp.ne.s32.totalorder %s261_s3, %s387_s7  ;;  %p393_p12 = scmp.lt.s32.totalorder %s387_s7, %s387_s7 }
  0x3e   :  { %297 = vmatpush3.bf16.msra.mxu0 %v296_v7 }
  0x3f   :  { %p394_p13 = por %p393_p12, %p392_p11 }
  0x41   :  { %290 = vmatmul.mubr.msk.f32.vlgmr.msra.gmra.mrb[0].mxu0 %vm70_vm1, %v58_v8  ;;  %p395_p0 = pnand %p394_p13, %p388_p10 }
 0x114   :  { %v140_v10 = vpop.f32.mrb[0].mxu0 }
 0x115   :  { %v141_v12 = vadd.f32 %v270_v9, %v140_v10  ;;  %v291_v13 = vpop.f32.mrb[1].mxu0 }
 0x117   :  { %v145_v15 = vmul.f32 %v144_v11, %v141_v12 }
 0x119   :  { %v147_v16 = vadd.f32 %v146_v14, %v145_v15 }
 0x11b   :  { %v502_v17 = vmul.f32 30.0, %v147_v16 }
 0x11d   :  { %v152_v18 = vand.u32 2139095040, %v502_v17  ;;  %v149_v22 = vand.u32 2147483647, %v502_v17  ;;  %vm151_vm9 = vcmp.lt.s32.totalorder %v502_v17, 0  ;;  %vm241_vm14 = vweird.f32 %v502_v17 }
 0x11f   :  { %v153_v19 = vshrl.u32 %v152_v18, 23  ;;  %v156_v26 = vand.u32 8388607, %v149_v22  ;;  %vm150_vm10 = vcmp.le.f32.partialorder %v149_v22, 0.7853982 }
 0x121   :  { %v272_v20 = vadd.s32 4294967169, %v153_v19  ;;  %v157_v44 = vor.u32 8388608, %v156_v26 }
 0x123   :  { %v159_v21 = vadd.s32 1, %v272_v20  ;;  %v197_v58 = vshll.u32 %v157_v44, 8 }
 0x125   :  { %vm160_vm2 = vcmp.gt.s32.totalorder %v159_v21, 0 }
 0x126   :  { %v161_v23 = vsel %vm160_vm2, %v159_v21, 0 }
 0x127   :  { %v163_v24 = vand.u32 31, %v161_v23  ;;  %v162_v27 = vshrl.u32 %v161_v23, 5 }
 0x129   :  { %v164_v25 = vsub.s32 32, %v163_v24  ;;  %v166_v29 = vshll.u32 %v423_v28, %v163_v24  ;;  %v169_v31 = vshll.u32 %v424_v30, %v163_v24  ;;  %v172_v35 = vshll.u32 %v425_v33, %v163_v24 }
 0x12a   :  { %v175_v38 = vshll.u32 %v426_v36, %v163_v24  ;;  %v178_v41 = vshll.u32 %v427_v39, %v163_v24  ;;  %vm181_vm3 = vcmp.lt.s32.totalorder %v162_v27, 1  ;;  %vm184_vm4 = vcmp.lt.s32.totalorder %v162_v27, 4 }
 0x12b   :  { %v167_v32 = vshrl.u32 %v424_v30, %v164_v25  ;;  %v170_v34 = vshrl.u32 %v425_v33, %v164_v25  ;;  %v173_v37 = vshrl.u32 %v426_v36, %v164_v25  ;;  %v176_v40 = vshrl.u32 %v427_v39, %v164_v25 }
 0x12c   :  { %v179_v43 = vshrl.u32 %v428_v42, %v164_v25  ;;  %v165_v53 = vshrl.u32 %v423_v28, %v164_v25  ;;  %vm183_vm5 = vcmp.lt.s32.totalorder %v162_v27, 3  ;;  %vm182_vm6 = vcmp.lt.s32.totalorder %v162_v27, 2 }
 0x12d   :  { %v168_v45 = vor.u32 %v167_v32, %v166_v29  ;;  %v171_v46 = vor.u32 %v170_v34, %v169_v31  ;;  %v174_v47 = vor.u32 %v173_v37, %v172_v35  ;;  %v177_v48 = vor.u32 %v176_v40, %v175_v38 }
 0x12e   :  { %v180_v49 = vor.u32 %v179_v43, %v178_v41 }
 0x12f   :  { %v186_v50 = vsel %vm184_vm4, %v174_v47, 2102212464  ;;  %v189_v51 = vsel %vm181_vm3, %v168_v45, %v171_v46  ;;  %v193_v52 = vsel %vm181_vm3, %v171_v46, %v174_v47  ;;  %v190_v54 = vsel %vm184_vm4, %v177_v48, 920167782 }
 0x130   :  { %v194_v55 = vsel %vm184_vm4, %v180_v49, 1326507024  ;;  %v191_v56 = vsel %vm183_vm5, %v174_v47, %v190_v54  ;;  %v185_v59 = vsel %vm181_vm3, %v165_v53, %v168_v45  ;;  %v187_v60 = vsel %vm183_vm5, %v171_v46, %v186_v50 }
 0x131   :  { %v195_v57 = vsel %vm183_vm5, %v177_v48, %v194_v55  ;;  %v192_v61 = vsel %vm182_vm6, %v189_v51, %v191_v56  ;;  %v188_v3 = vsel %vm182_vm6, %v185_v59, %v187_v60 }
 0x132   :  { %v196_v62 = vsel %vm182_vm6, %v193_v52, %v195_v57  ;;  %v511_v1 = vmul.u32.u64.low %v197_v58, %v192_v61  ;;  %v512_v2 = vmul.u32.u64.high %v197_v58, %v192_v61, %v511_v1  ;;  %v204_v5 = vmul.u32 %v197_v58, %v188_v3 }
 0x133   :  { %v508_v63 = vmul.u32.u64.low %v197_v58, %v196_v62  ;;  %v509_v0 = vmul.u32.u64.high %v197_v58, %v196_v62, %v508_v63 }
 0x134   :  { %v207_v4 = vadd.s32 1, %v512_v2 }
 0x135   :  { %vm206_vm7 = vc.u32 %v509_v0, %v511_v1  ;;  %v205_v18 = vadd.s32 %v511_v1, %v509_v0 }
 0x136   :  { %v208_v6 = vsel %vm206_vm7, %v207_v4, %v512_v2 }
 0x137   :  { %v209_v7 = vadd.s32 %v208_v6, %v204_v5 }
 0x139   :  { %v210_v8 = vadd.s32 536870912, %v209_v7 }
 0x13b   :  { %v211_v9 = vshrl.u32 %v210_v8, 30 }
 0x13d   :  { %v212_v10 = vshll.u32 %v211_v9, 30  ;;  %v235_v31 = vsub.s32 4, %v211_v9 }
 0x13f   :  { %v213_v11 = vsub.s32 %v209_v7, %v212_v10  ;;  %v236_v34 = vsel %vm151_vm9, %v235_v31, %v211_v9 }
 0x140   :  { %v238_v36 = vsel %vm150_vm10, 0, %v236_v34 }
 0x141   :  { %v215_v12 = vsub.s32 0, %v213_v11  ;;  %v242_v37 = vadd.s32 3, %v238_v36 }
 0x143   :  { %v273_v13 = vmin.u32 %v215_v12, %v213_v11  ;;  %v243_v38 = vand.u32 3, %v242_v37 }
 0x145   :  { %v217_v14 = vclz %v273_v13  ;;  %vm248_vm11 = vcmp.eq.s32.totalorder %v243_v38, 2  ;;  %vm245_vm12 = vcmp.eq.s32.totalorder %v243_v38, 0  ;;  %vm244_vm13 = vcmp.lt.s32.totalorder %v243_v38, 2 }
 0x147   :  { %v274_v15 = vadd.s32 4294967294, %v217_v14 }
 0x149   :  { %vm275_vm8 = vcmp.lt.s32.totalorder %v274_v15, 0 }
 0x14a   :  { %v220_v16 = vsel %vm275_vm8, 0, %v274_v15 }
 0x14b   :  { %v221_v19 = vsub.s32 32, %v220_v16  ;;  %v225_v20 = vsub.s32 4294967266, %v220_v16  ;;  %v222_v21 = vshll.u32 %v213_v11, %v220_v16 }
 0x14d   :  { %v223_v23 = vshrl.u32 %v205_v18, %v221_v19  ;;  %v226_v24 = vadd.s32 127, %v225_v20 }
 0x14f   :  { %v224_v25 = vor.u32 %v223_v23, %v222_v21  ;;  %v227_v26 = vshll.u32 %v226_v24, 23 }
 0x151   :  { %v228_v27 = vor.u32 4788187, %v227_v26  ;;  %v231_v29 = vcvt.s32.f32 %v224_v25 }
 0x153   :  { %v229_v28 = vand.u32 2147483647, %v228_v27 }
 0x155   :  { %v232_v30 = vmul.f32 %v231_v29, %v229_v28 }
 0x157   :  { %v233_v32 = vxor.u32 2147483648, %v232_v30 }
 0x159   :  { %v234_v33 = vsel %vm151_vm9, %v233_v32, %v232_v30 }
 0x15a   :  { %v237_v35 = vsel %vm150_vm10, %v502_v17, %v234_v33 }
 0x15b   :  { %317 = vcosq.f32 %v237_v35 }
 0x15c   :  { %319 = vsinq.f32 %v237_v35 }
 0x165   :  { %v318_v39 = vpop.eup %317 }
 0x166   :  { %v320_v40 = vpop.eup %319  ;;  %v249_v41 = vxor.u32 2147483648, %v318_v39 }
 0x167   :  { %v246_v42 = vxor.u32 2147483648, %v320_v40 }
 0x168   :  { %v250_v43 = vsel %vm248_vm11, %v249_v41, %v320_v40 }
 0x169   :  { %v247_v22 = vsel %vm245_vm12, %v318_v39, %v246_v42 }
 0x16a   :  { %v251_v44 = vsel %vm244_vm13, %v247_v22, %v250_v43 }
 0x16b   :  { %v252_v45 = vsel %vm241_vm14, nan, %v251_v44 }
 0x16c   :  { %253 = vst [vmem:[#allocation8] sm:$0xff] %v252_v45 }
 0x16d   :  { %398 = shalt.err (!%p395_p0)
}
 0x16e   :  { %s399_s10 = scalar_lea.hbm %s540_s5, 128 }
 0x16f   :  { %p400_p1 = scmp.ne.s32.totalorder %s540_s5, %s399_s10  ;;  %p403_p2 = scmp.lt.u32.totalorder %s399_s10, %s540_s5 }
 0x171   :  { %p405_p3 = pnand %p403_p2, %p400_p1 }
 0x173   :  { %408 = shalt.err (!%p405_p3)
}
 0x174   :  { %263 = dma.vmem_to_hbm [thread:$0]  %s261_s3, 128, %s540_s5, [#allocation4]  }
 0x175   :  { %413 = dma.done.wait [#allocation4], 128  }
 0x176   :  { %414 = vsyncadd [#allocation4], 4294967168 }
 0x177   :  { %267 = vsyncpa [#allocation3], 1 }
 0x178   :  { %268 = vsyncpa [#allocation6], 1 }
 0x179   :  { %269 = vsyncpa [#allocation4], 1 }

</bundles_post_ra>
